<compile_context>
chip_gen: v7x
topology: tpu7x:2x2x1
jax: 0.10.0
libtpu: 0.0.40
codegen_flags: <defaults>
</compile_context>

<pallas_src>
import functools

import jax
import jax.numpy as jnp
import numpy as np
from jax import lax
from jax.experimental import pallas as pl
from jax.experimental.pallas import tpu as pltpu

# Module hyper-parameters (FAPELoss.__init__ defaults)
D_CLAMP = 10.0
EPS = 1e-8
SCALE = 10.0
CLAMP_PROB = 0.9  # TODO(synk): stochastic clamping (random.uniform < clamp_prob) is not
#                   reproducible in a deterministic kernel; we always clamp (the p=0.9
#                   majority branch), matching forward(clamp_val=d_clamp).


def _round_up(x, m):
    return ((x + m - 1) // m) * m


# ----------------------------- plain-JAX glue ------------------------------
def _rigid_from_backbone(coords):
    """Rigids.RigidFromBackbone: Gram-Schmidt frame from N, CA, C (atoms 0,1,2).

    coords: (b, n, a, 3) -> R: (b, n, 3, 3) with R[..., k, c] (row k = xyz, col c = basis),
    t: (b, n, 3) = CA.
    """
    N = coords[:, :, 0, :]
    CA = coords[:, :, 1, :]
    C = coords[:, :, 2, :]
    v1 = C - CA
    v2 = N - CA
    e1 = v1 / jnp.sqrt(jnp.sum(v1 * v1, axis=-1, keepdims=True) + EPS)
    u2 = v2 - e1 * jnp.sum(e1 * v2, axis=-1, keepdims=True)
    e2 = u2 / jnp.sqrt(jnp.sum(u2 * u2, axis=-1, keepdims=True) + EPS)
    e3 = jnp.cross(e1, e2)
    R = jnp.stack([e1, e2, e3], axis=-1)
    return R, CA


def _pack_inputs(pred_coords, true_coords, tn, tp):
    """Pack frames/points into MXU-friendly operands F:(b,3,n_pad,8), X:(b,8,p_pad)."""
    b, n, a, _ = true_coords.shape
    P = n * a
    # Center per batch (translation-invariant; improves f32 cancellation of the
    # hoisted-bias association for coordinates far from the origin).
    pred_coords = pred_coords - jnp.mean(pred_coords, axis=(1, 2), keepdims=True)
    true_coords = true_coords - jnp.mean(true_coords, axis=(1, 2), keepdims=True)

    pR, pt = _rigid_from_backbone(pred_coords)
    tR, tt = _rigid_from_backbone(true_coords)
    # bias[b,i,c] = sum_k pR[b,i,k,c]*pt[b,i,k] - tR[b,i,k,c]*tt[b,i,k]   (elementwise, full f32)
    bias = (jnp.sum(pR * pt[:, :, :, None], axis=2)
            - jnp.sum(tR * tt[:, :, :, None], axis=2))                    # (b, n, 3)

    Fp = jnp.transpose(pR, (0, 3, 1, 2))                                   # (b, 3c, n, 3k)
    Ft = jnp.transpose(tR, (0, 3, 1, 2))
    Fb = jnp.transpose(bias, (0, 2, 1))[..., None]                         # (b, 3c, n, 1)
    F = jnp.concatenate([Fp, -Ft, -Fb, jnp.zeros_like(Fb)], axis=-1)       # (b, 3, n, 8)

    X = jnp.concatenate(
        [jnp.transpose(pred_coords.reshape(b, P, 3), (0, 2, 1)),
         jnp.transpose(true_coords.reshape(b, P, 3), (0, 2, 1)),
         jnp.ones((b, 1, P), jnp.float32),
         jnp.zeros((b, 1, P), jnp.float32)], axis=1)                       # (b, 8, P)

    n_pad = _round_up(n, tn)
    p_pad = _round_up(P, tp)
    F = jnp.pad(F, ((0, 0), (0, 0), (0, n_pad - n), (0, 0)))
    X = jnp.pad(X, ((0, 0), (0, 0), (0, p_pad - P)))                        # ones-row padded with 0
    return F, X, n_pad, p_pad


# ------------------------------ Pallas kernels ------------------------------
def _tile_sq(f_ref, x_ref):
    """Squared local-frame deviations for one tile via 3 MXU matmuls. -> (TN, TP)."""
    sq = None
    for c in range(3):  # local-frame coordinate c
        d = jnp.dot(f_ref[c], x_ref[...],
                    precision=lax.Precision.HIGHEST,
                    preferred_element_type=jnp.float32)                     # (TN, TP)
        sq = d * d if sq is None else sq + d * d
    return sq


def _fape_sum_kernel(f_ref, x_ref, out_ref, *, clamp_sq, eps):
    pi = pl.program_id(2)

    @pl.when(pi == 0)
    def _():
        out_ref[...] = jnp.zeros_like(out_ref)

    sq = _tile_sq(f_ref, x_ref)
    # safe_norm + clamp, done in the squared domain: one EUP sqrt, one VALU min.
    diffs = jnp.sqrt(jnp.minimum(sq + eps, clamp_sq))

    # Fold (TN, TP) -> (8, 128) with pure VALU adds (no XLU cross-lane reduce,
    # no 1-lane masked store per grid step); wrapper sums the tiny partials.
    tn, tp = diffs.shape
    part = diffs[:, :128]
    for q in range(1, tp // 128):
        part = part + diffs[:, q * 128:(q + 1) * 128]
    vacc = part[:8, :]
    for r in range(1, tn // 8):
        vacc = vacc + part[r * 8:(r + 1) * 8, :]
    out_ref[...] += vacc


def _fape_diffs_kernel(f_ref, x_ref, out_ref, *, clamp_sq, eps, inv_scale):
    sq = _tile_sq(f_ref, x_ref)
    out_ref[...] = jnp.sqrt(jnp.minimum(sq + eps, clamp_sq)) * inv_scale


# ------------------------------ public wrapper ------------------------------
def fape_loss(pred_coords, true_coords, clamp_val=None, reduce=True,
              tile_n=256, tile_p=2048):
    """FAPELoss.forward (coord_mask=None, rigids derived from the backbone).

    pred_coords, true_coords: (b, n, a, 3) float32
    """
    # TODO(synk): coord_mask / mask_fill path and user-supplied pred/true rigids are
    #             not implemented (optional args, None defaults in the reference).
    pred_coords = pred_coords.astype(jnp.float32)
    true_coords = true_coords.astype(jnp.float32)
    b, n, a, _ = true_coords.shape
    P = n * a

    tn = min(tile_n, _round_up(n, 8))
    tp = min(tile_p, _round_up(P, 128))
    F, X, n_pad, p_pad = _pack_inputs(pred_coords, true_coords, tn, tp)

    grid = (b, n_pad // tn, p_pad // tp)
    cval = float(clamp_val) if clamp_val is not None else D_CLAMP

    f_spec = pl.BlockSpec((pl.Squeezed(), 3, tn, 8),
                          lambda bi, ni, pi: (bi, 0, ni, 0))
    x_spec = pl.BlockSpec((pl.Squeezed(), 8, tp),
                          lambda bi, ni, pi: (bi, 0, pi))
    cparams = dict(vmem_limit_bytes=48 * 1024 * 1024)

    if reduce:
        kernel = functools.partial(_fape_sum_kernel, clamp_sq=cval * cval, eps=EPS)
        partials = pl.pallas_call(
            kernel,
            out_shape=jax.ShapeDtypeStruct((b, n_pad // tn, 8, 128), jnp.float32),
            grid=grid,
            in_specs=[f_spec, x_spec],
            out_specs=pl.BlockSpec((pl.Squeezed(), pl.Squeezed(), 8, 128),
                                   lambda bi, ni, pi: (bi, ni, 0, 0)),
            compiler_params=pltpu.CompilerParams(
                dimension_semantics=("parallel", "parallel", "arbitrary"),
                **cparams),
        )(F, X)
        # Analytic padding correction: every padded (row or column) element contributes
        # exactly min(sqrt(eps), clamp) -- zero F rows / zero X columns give sq == 0.
        pad_val = jnp.sqrt(jnp.minimum(jnp.float32(EPS), jnp.float32(cval) ** 2))
        n_padded = b * (n_pad * p_pad - n * P)
        total = jnp.sum(partials) - jnp.float32(n_padded) * pad_val
        return total * (1.0 / (b * n * P * SCALE))

    kernel = functools.partial(_fape_diffs_kernel, clamp_sq=cval * cval, eps=EPS,
                               inv_scale=1.0 / SCALE)
    diffs = pl.pallas_call(
        kernel,
        out_shape=jax.ShapeDtypeStruct((b, n_pad, p_pad), jnp.float32),
        grid=grid,
        in_specs=[f_spec, x_spec],
        out_specs=pl.BlockSpec((pl.Squeezed(), tn, tp),
                               lambda bi, ni, pi: (bi, ni, pi)),
        compiler_params=pltpu.CompilerParams(
            dimension_semantics=("parallel", "parallel", "parallel"),
            **cparams),
    )(F, X)
    # 1/scale already folded into the kernel store; only the boundary slice remains.
    return diffs[:, :n, :P]


# --------------------------- pure-JAX reference -----------------------------
def _fape_ref(pred_coords, true_coords, clamp_val=D_CLAMP, reduce=True):
    b, n, a, _ = true_coords.shape
    P = n * a
    pR, pt = _rigid_from_backbone(pred_coords)
    tR, tt = _rigid_from_backbone(true_coords)
    dp = pred_coords.reshape(b, 1, P, 3) - pt[:, :, None, :]
    dt = true_coords.reshape(b, 1, P, 3) - tt[:, :, None, :]
    p_loc = jnp.einsum('bnkc,bnpk->bnpc', pR, dp, precision=lax.Precision.HIGHEST)
    t_loc = jnp.einsum('bnkc,bnpk->bnpc', tR, dt, precision=lax.Precision.HIGHEST)
    d = p_loc - t_loc
    diffs = jnp.minimum(jnp.sqrt(jnp.sum(d * d, axis=-1) + EPS), clamp_val)
    if reduce:
        return jnp.mean(diffs) / SCALE
    return diffs / SCALE


if __name__ == "__main__":
    key = jax.random.PRNGKey(0)
    k1, k2 = jax.random.split(key)

    # Small single-tile case (b=2, n=8 residues, a=4 atoms/residue).
    b, n, a = 2, 8, 4
    true_coords = 3.0 * jax.random.normal(k1, (b, n, a, 3), jnp.float32)
    pred_coords = true_coords + 0.5 * jax.random.normal(k2, (b, n, a, 3), jnp.float32)

    loss = jax.block_until_ready(fape_loss(pred_coords, true_coords))
    ref = jax.block_until_ready(_fape_ref(pred_coords, true_coords))
    assert np.isfinite(float(loss))
    assert np.allclose(np.asarray(loss), np.asarray(ref), rtol=2e-4, atol=2e-4), (
        float(loss), float(ref))

    diffs = jax.block_until_ready(fape_loss(pred_coords, true_coords, reduce=False))
    ref_diffs = jax.block_until_ready(_fape_ref(pred_coords, true_coords, reduce=False))
    assert diffs.shape == ref_diffs.shape
    assert np.allclose(np.asarray(diffs), np.asarray(ref_diffs), rtol=2e-4, atol=2e-4)

    # Multi-tile case: exercises per-(batch, row-tile) partial blocks, accumulation
    # over the P axis and the analytic padding correction (P=144 -> p_pad=256).
    k3, k4 = jax.random.split(k2)
    b2, n2, a2 = 2, 24, 6
    tc2 = 3.0 * jax.random.normal(k3, (b2, n2, a2, 3), jnp.float32)
    pc2 = tc2 + 0.5 * jax.random.normal(k4, (b2, n2, a2, 3), jnp.float32)

    loss2 = jax.block_until_ready(fape_loss(pc2, tc2, tile_n=8, tile_p=128))
    ref2 = jax.block_until_ready(_fape_ref(pc2, tc2))
    assert np.allclose(np.asarray(loss2), np.asarray(ref2), rtol=2e-4, atol=2e-4), (
        float(loss2), float(ref2))

    diffs2 = jax.block_until_ready(fape_loss(pc2, tc2, reduce=False, tile_n=8, tile_p=128))
    refd2 = jax.block_until_ready(_fape_ref(pc2, tc2, reduce=False))
    assert np.allclose(np.asarray(diffs2), np.asarray(refd2), rtol=2e-4, atol=2e-4)

    # Explicit clamp_val (exercises the clamp branch heavily).
    loss3 = jax.block_until_ready(fape_loss(pc2, tc2, clamp_val=1.0))
    ref3 = jax.block_until_ready(_fape_ref(pc2, tc2, clamp_val=1.0))
    assert np.allclose(np.asarray(loss3), np.asarray(ref3), rtol=2e-4, atol=2e-4), (
        float(loss3), float(ref3))

    print("KERNEL_OK")
</pallas_src>

<mosaic_0001>
module attributes {stable_mosaic.version = 11 : i64} {
  func.func @_fape_sum_kernel(%arg0: i32, %arg1: i32, %arg2: i32, %arg3: memref<1x3x8x8xf32, #tpu.memory_space<vmem>>, %arg4: memref<1x8x128xf32, #tpu.memory_space<vmem>>, %arg5: memref<1x1x8x128xf32, #tpu.memory_space<vmem>>) attributes {dimension_semantics = [#tpu.dimension_semantics<parallel>, #tpu.dimension_semantics<parallel>, #tpu.dimension_semantics<arbitrary>], iteration_bounds = array<i64: 2, 1, 1>, scalar_prefetch = 0 : i64, scratch_operands = 0 : i64, tpu.core_type = #tpu.core_type<tc>, window_params = [{transform_indices = @transform_0, window_bounds = array<i64: 1, 3, 8, 8>}, {transform_indices = @transform_1, window_bounds = array<i64: 1, 8, 128>}, {transform_indices = @transform_2, window_bounds = array<i64: 1, 1, 8, 128>}]} {
    %c0_i32 = arith.constant 0 : i32
    %0 = arith.cmpi eq, %arg2, %c0_i32 : i32
    %1 = arith.extui %0 : i1 to i32
    %c0_i32_0 = arith.constant 0 : i32
    %2 = arith.cmpi ne, %1, %c0_i32_0 : i32
    scf.if %2 {
      %cst_31 = arith.constant 0.000000e+00 : f32
      %34 = vector.broadcast %cst_31 : f32 to vector<8x128xf32>
      %c0_32 = arith.constant 0 : index
      %c0_33 = arith.constant 0 : index
      %c0_34 = arith.constant 0 : index
      %c0_35 = arith.constant 0 : index
      %35 = vector.load %arg5[%c0_32, %c0_33, %c0_34, %c0_35] : memref<1x1x8x128xf32, #tpu.memory_space<vmem>>, vector<1x1x8x128xf32>
      %36 = vector.shape_cast %35 : vector<1x1x8x128xf32> to vector<8x128xf32>
      %37 = vector.shape_cast %34 : vector<8x128xf32> to vector<1x1x8x128xf32>
      tpu.vector_store %arg5[%c0_32, %c0_33, %c0_34, %c0_35], %37 {strides = array<i32>} : memref<1x1x8x128xf32, #tpu.memory_space<vmem>>, vector<1x1x8x128xf32>,
    } else {
    }
    %c0 = arith.constant 0 : index
    %c0_1 = arith.constant 0 : index
    %c0_2 = arith.constant 0 : index
    %c0_3 = arith.constant 0 : index
    %3 = vector.load %arg3[%c0, %c0_1, %c0_2, %c0_3] : memref<1x3x8x8xf32, #tpu.memory_space<vmem>>, vector<1x1x8x8xf32>
    %4 = vector.shape_cast %3 : vector<1x1x8x8xf32> to vector<8x8xf32>
    %c0_4 = arith.constant 0 : index
    %c0_5 = arith.constant 0 : index
    %c0_6 = arith.constant 0 : index
    %5 = vector.load %arg4[%c0_4, %c0_5, %c0_6] : memref<1x8x128xf32, #tpu.memory_space<vmem>>, vector<1x8x128xf32>
    %6 = vector.shape_cast %5 : vector<1x8x128xf32> to vector<8x128xf32>
    %cst = arith.constant dense<0.000000e+00> : vector<8x128xf32>
    %7 = tpu.matmul %4, %6, %cst {dimension_numbers = #tpu.dot_dimension_numbers<[1], [0], [0], [1], [0, 0, 1, 1], [], []>, precision = #tpu.contract_precision<fp32>} : vector<8x8xf32>, vector<8x128xf32>, vector<8x128xf32> -> vector<8x128xf32>
    %8 = arith.mulf %7, %7 : vector<8x128xf32>
    %c0_7 = arith.constant 0 : index
    %c1 = arith.constant 1 : index
    %c0_8 = arith.constant 0 : index
    %c0_9 = arith.constant 0 : index
    %9 = vector.load %arg3[%c0_7, %c1, %c0_8, %c0_9] : memref<1x3x8x8xf32, #tpu.memory_space<vmem>>, vector<1x1x8x8xf32>
    %10 = vector.shape_cast %9 : vector<1x1x8x8xf32> to vector<8x8xf32>
    %c0_10 = arith.constant 0 : index
    %c0_11 = arith.constant 0 : index
    %c0_12 = arith.constant 0 : index
    %11 = vector.load %arg4[%c0_10, %c0_11, %c0_12] : memref<1x8x128xf32, #tpu.memory_space<vmem>>, vector<1x8x128xf32>
    %12 = vector.shape_cast %11 : vector<1x8x128xf32> to vector<8x128xf32>
    %cst_13 = arith.constant dense<0.000000e+00> : vector<8x128xf32>
    %13 = tpu.matmul %10, %12, %cst_13 {dimension_numbers = #tpu.dot_dimension_numbers<[1], [0], [0], [1], [0, 0, 1, 1], [], []>, precision = #tpu.contract_precision<fp32>} : vector<8x8xf32>, vector<8x128xf32>, vector<8x128xf32> -> vector<8x128xf32>
    %14 = arith.mulf %13, %13 : vector<8x128xf32>
    %15 = arith.addf %8, %14 : vector<8x128xf32>
    %c0_14 = arith.constant 0 : index
    %c2 = arith.constant 2 : index
    %c0_15 = arith.constant 0 : index
    %c0_16 = arith.constant 0 : index
    %16 = vector.load %arg3[%c0_14, %c2, %c0_15, %c0_16] : memref<1x3x8x8xf32, #tpu.memory_space<vmem>>, vector<1x1x8x8xf32>
    %17 = vector.shape_cast %16 : vector<1x1x8x8xf32> to vector<8x8xf32>
    %c0_17 = arith.constant 0 : index
    %c0_18 = arith.constant 0 : index
    %c0_19 = arith.constant 0 : index
    %18 = vector.load %arg4[%c0_17, %c0_18, %c0_19] : memref<1x8x128xf32, #tpu.memory_space<vmem>>, vector<1x8x128xf32>
    %19 = vector.shape_cast %18 : vector<1x8x128xf32> to vector<8x128xf32>
    %cst_20 = arith.constant dense<0.000000e+00> : vector<8x128xf32>
    %20 = tpu.matmul %17, %19, %cst_20 {dimension_numbers = #tpu.dot_dimension_numbers<[1], [0], [0], [1], [0, 0, 1, 1], [], []>, precision = #tpu.contract_precision<fp32>} : vector<8x8xf32>, vector<8x128xf32>, vector<8x128xf32> -> vector<8x128xf32>
    %21 = arith.mulf %20, %20 : vector<8x128xf32>
    %22 = arith.addf %15, %21 : vector<8x128xf32>
    %cst_21 = arith.constant 9.99999993E-9 : f32
    %23 = vector.broadcast %cst_21 : f32 to vector<8x128xf32>
    %24 = arith.addf %22, %23 : vector<8x128xf32>
    %cst_22 = arith.constant 1.000000e+02 : f32
    %25 = vector.broadcast %cst_22 : f32 to vector<8x128xf32>
    %26 = arith.minimumf %24, %25 : vector<8x128xf32>
    %27 = math.sqrt %26 : vector<8x128xf32>
    %c0_23 = arith.constant 0 : index
    %c0_24 = arith.constant 0 : index
    %c0_25 = arith.constant 0 : index
    %c0_26 = arith.constant 0 : index
    %28 = vector.load %arg5[%c0_23, %c0_24, %c0_25, %c0_26] : memref<1x1x8x128xf32, #tpu.memory_space<vmem>>, vector<1x1x8x128xf32>
    %29 = vector.shape_cast %28 : vector<1x1x8x128xf32> to vector<8x128xf32>
    %30 = arith.addf %29, %27 : vector<8x128xf32>
    %c0_27 = arith.constant 0 : index
    %c0_28 = arith.constant 0 : index
    %c0_29 = arith.constant 0 : index
    %c0_30 = arith.constant 0 : index
    %31 = vector.load %arg5[%c0_27, %c0_28, %c0_29, %c0_30] : memref<1x1x8x128xf32, #tpu.memory_space<vmem>>, vector<1x1x8x128xf32>
    %32 = vector.shape_cast %31 : vector<1x1x8x128xf32> to vector<8x128xf32>
    %33 = vector.shape_cast %30 : vector<8x128xf32> to vector<1x1x8x128xf32>
    tpu.vector_store %arg5[%c0_27, %c0_28, %c0_29, %c0_30], %33 {strides = array<i32>} : memref<1x1x8x128xf32, #tpu.memory_space<vmem>>, vector<1x1x8x128xf32>,
    return
  }
  func.func @transform_0(%arg0: i32, %arg1: i32, %arg2: i32) -> (i32, i32, i32, i32) {
    %c0_i32 = arith.constant 0 : i32
    %c0_i32_0 = arith.constant 0 : i32
    %c0_i32_1 = arith.constant 0 : i32
    return %arg0, %c0_i32, %arg1, %c0_i32_0 : i32, i32, i32, i32
  }
  func.func @transform_1(%arg0: i32, %arg1: i32, %arg2: i32) -> (i32, i32, i32) {
    %c0_i32 = arith.constant 0 : i32
    %c0_i32_0 = arith.constant 0 : i32
    return %arg0, %c0_i32, %arg2 : i32, i32, i32
  }
  func.func @transform_2(%arg0: i32, %arg1: i32, %arg2: i32) -> (i32, i32, i32, i32) {
    %c0_i32 = arith.constant 0 : i32
    %c0_i32_0 = arith.constant 0 : i32
    %c0_i32_1 = arith.constant 0 : i32
    return %arg0, %arg1, %c0_i32, %c0_i32_0 : i32, i32, i32, i32
  }
}

</mosaic_0001>

<bundles_post_ra>
// kernel: tpu_custom_call.1
= control target key start
LH: loop header
LB: loop body
LE: loop exit
PB: predicated region body
PF: predicated region fallthrough
CT: control target
= control target key end

     0   :  { %7 = vsyncpa [#allocation3], 0  ;;  %s2448_s0 = inlined_call_operand.hbm [shape: f32[2,3,8,8], index: 0, kind: input, shape index: {}]   ;;  %s2449_s1 = inlined_call_operand.hbm [shape: f32[2,8,128], index: 1, kind: input, shape index: {}]   ;;  %s2450_s2 = inlined_call_operand.hbm [shape: f32[2,1,8,128], index: 2, kind: output, shape index: {}]  }
   0x1   :  { %9 = vsyncpa [#allocation3 + $0x1], 0 }
   0x2   :  { %10 = vsyncpa [#allocation6], 0 }
   0x3   :  { %12 = vsyncpa [#allocation6 + $0x1], 0 }
   0x4   :  { %13 = vsyncpa [#allocation4], 0 }
   0x5   :  { %15 = vsyncpa [#allocation4 + $0x1], 0  ;;  %s2142_s9 = smov 0   ;;  %s2144_s10 = smov 0  }
   0x6   :  { %s2146_s11 = smov 0   ;;  %s2148_s12 = smov 0  }
   0x7   :  { %s2150_s13 = smov 0   ;;  %s2152_s14 = smov 0  }
   0x8 LB: > { %s1725_s15 = sadd.s32 4294967295, %s2118_s14   ;;  %s1726_s16 = sadd.s32 4294967294, %s2118_s14   ;;  %s2118_s14 = sphi %s2152_s14, %s21_s14   ;;  %s2114_s13 = sphi %s2150_s13, %s2469_s13   ;;  %s2110_s12 = sphi %s2148_s12, %s2468_s12   ;;  %s2106_s11 = sphi %s2146_s11, %s2467_s11   ;;  %s2102_s10 = sphi %s2144_s10, %s2466_s10   ;;  %s2098_s9 = sphi %s2142_s9, %s2465_s9  }
   0x9   : > { %s40_s17 = sadd.s32 1, %s2114_s13  ;;  %s49_s18 = sadd.s32 1, %s2106_s11 }
   0xa   : > { %p42_p0 = scmp.ge.s32.totalorder %s40_s17, 2  ;;  %p56_p1 = scmp.ne.s32.totalorder %s2106_s11, %s2102_s10 }
   0xb   : > { %p57_p2 = scmp.eq.s32.totalorder %s2118_s14, 0  ;;  %p62_p3 = scmp.ne.s32.totalorder %s2102_s10, %s2098_s9 }
   0xc   : > { %s2471_s17 = smov (%p42_p0, %s40_s17), 0  ;;  %p63_p5 = scmp.eq.s32.totalorder %s1725_s15, 0 }
   0xd   : > { %p2183_p4 = por %p57_p2, %p56_p1  ;;  %s44_s20 = ssub.s32 %s2114_s13, %s2471_s17 }
   0xe   : > { %p116_p6 = scmp.eq.s32.totalorder %s1725_s15, 1  ;;  %p47_p7 = scmp.eq.s32.totalorder %s44_s20, 0 }
   0xf   : > { %p2189_p8 = por %p63_p5, %p62_p3  ;;  %p122_p10 = scmp.eq.s32.totalorder %s1726_s16, 1 }
  0x10   : > { %p2193_p9 = por %p116_p6, %p56_p1  ;;  %p1916_p13 = scmp.lt.s32.totalorder %s2118_s14, 2 }
  0x11   : > { %s2454_s21 = scalar_select %p2189_p8, 1, 0 }
  0x12   : > { %s2455_s22 = scalar_select %p2193_p9, 1, 0 }
  0x13   : > { %s2198_s23 = scalar_select %p47_p7, %s2106_s11, %s49_s18  }
  0x14   : > { %p2200_p11 = por %p122_p10, %p62_p3  ;;  %s2207_s25 = sand.u32 1, %s2106_s11  }
  0x15   : > { %s1896_s26 = smul.u32 24, %s2207_s25  ;;  %p2213_p0 = pnand %p1916_p13, %p2183_p4 }
  0x16   : > { %s2456_s24 = scalar_select %p2200_p11, 1, 0 }
  0x17   : > { %s1897_s27 = smul.u32 384, %s2114_s13  ;;  %s146_s4 = scalar_lea.vmem [#allocation2], %s1896_s26 }
  0x18   : > { %s154_s5 = sshll.u32 %s146_s4, 4  ;;  %s143_s6 = scalar_lea.sflag [#allocation3], %s2207_s25  ;;  %s2222_s5 = int_to_ptr.vmem [resolvable:$true] %s154_s5 }
  0x19   : > { %s2220_s3 = scalar_lea.hbm %s2448_s0, %s1897_s27  ;;  %p1974_p3 = pneg %p2213_p0 }
  0x1a   : > { %s1972_s7 = scalar_lea.hbm %s2220_s3, 384  ;;  %s1977_s16 = scalar_lea.hbm %s2448_s0, 768 }
  0x1b   : > { %p1973_p2 = scmp.ne.s32.totalorder %s2220_s3, %s1972_s7  ;;  %p1978_p6 = scmp.lt.u32.totalorder %s2220_s3, %s2448_s0 }
  0x1c   : > { %p1979_p7 = scmp.lt.u32.totalorder %s1977_s16, %s1972_s7  ;;  %p1981_p13 = scmp.lt.u32.totalorder %s1972_s7, %s2220_s3 }
  0x1d   : > { %p1975_p4 = pnand %p1974_p3, %p1973_p2 }
  0x1e   : > { %p1980_p10 = por %p1979_p7, %p1978_p6 }
  0x1f   : > { %p1976_p5 = pneg %p1975_p4 }
  0x20   : > { %p1982_p12 = por %p1981_p13, %p1980_p10 }
  0x22   : > { %p1983_p1 = pnand %p1982_p12, %p1976_p5 }
  0x24   : > { %1986 = shalt.err (!%p1983_p1)
}
  0x25   : > { %s1987_s20 = scalar_lea.vmem %s2222_s5, 384  ;;  %s2120_s26 = smov [#allocation2]  }
  0x26   : > { %p1988_p2 = scmp.ne.s32.totalorder %s2222_s5, %s1987_s20  ;;  %s1992_s27 = sshll.u32 %s2120_s26, 4  ;;  %s1993_s27 = int_to_ptr.vmem [resolvable:$false] %s1992_s27 }
  0x27   : > { %s1994_s29 = scalar_lea.vmem %s1993_s27, 768  ;;  %p1995_p9 = scmp.lt.s32.totalorder %s2222_s5, %s1993_s27 }
  0x28   : > { %p1990_p4 = pnand %p1988_p2, %p1974_p3  ;;  %p1996_p6 = scmp.lt.s32.totalorder %s1994_s29, %s1987_s20 }
  0x2a   : > { %p1991_p11 = pneg %p1990_p4  ;;  %p1997_p7 = por %p1996_p6, %p1995_p9 }
  0x2c   : > { %p1998_p10 = pnand %p1997_p7, %p1991_p11 }
  0x2e   : > { %2001 = shalt.err (!%p1998_p10)
}
  0x2f   : > { %s2121_s30 = smov 128   ;;  %s2122_s4 = smov 8  }
  0x30   : > { %1908 = dma.hbm_to_vmem [thread:$0]  (!%p2213_p0), %s2220_s3, 384, %s2222_s5, %s143_s6, %s2121_s30, %s2121_s30, %s2122_s4  }
  0x31   : > { %p181_p12 = scmp.lt.s32.totalorder %s2118_s14, 3  ;;  %s1730_s7 = sshll.u32 %s2207_s25, 3 }
  0x32   : > { %s1731_s8 = sshll.u32 %s2114_s13, 7  ;;  %p2458_p9 = scmp.ge.s32.totalorder %s2118_s14, 1 }
  0x33   : > { %s2265_s19 = scalar_lea.hbm %s2449_s1, %s1731_s8  ;;  %s168_s20 = scalar_lea.vmem [#allocation5], %s1730_s7 }
  0x34   : > { %p2258_p11 = pnand %p2458_p9, %p181_p12  ;;  %s176_s26 = sshll.u32 %s168_s20, 4  ;;  %s177_s26 = int_to_ptr.vmem [resolvable:$true] %s176_s26 }
  0x35   : > { %s165_s3 = scalar_lea.sflag [#allocation6], %s2207_s25  ;;  %s2002_s5 = scalar_lea.hbm %s2265_s19, 128 }
  0x36   : > { %s2459_s15 = scalar_select %p2258_p11, 1, 0 }
  0x37   : > { %p2003_p1 = scmp.ne.s32.totalorder %s2265_s19, %s2002_s5  ;;  %s2007_s29 = scalar_lea.hbm %s2449_s1, 256 }
  0x38   : > { %p2008_p2 = scmp.lt.u32.totalorder %s2265_s19, %s2449_s1  ;;  %p2009_p4 = scmp.lt.u32.totalorder %s2007_s29, %s2002_s5 }
  0x39   : > { %p2005_p5 = pnand %p2003_p1, %p1974_p3  ;;  %p2011_p7 = scmp.lt.u32.totalorder %s2002_s5, %s2265_s19 }
  0x3a   : > { %p2010_p6 = por %p2009_p4, %p2008_p2 }
  0x3b   : > { %p2006_p13 = pneg %p2005_p5 }
  0x3c   : > { %p2012_p10 = por %p2011_p7, %p2010_p6 }
  0x3e   : > { %p2013_p12 = pnand %p2012_p10, %p2006_p13 }
  0x40   : > { %2016 = shalt.err (!%p2013_p12)
}
  0x41   : > { %s2017_s25 = scalar_lea.vmem %s177_s26, 128  ;;  %s2123_s7 = smov [#allocation5]  }
  0x42   : > { %p2018_p9 = scmp.ne.s32.totalorder %s177_s26, %s2017_s25  ;;  %s2022_s8 = sshll.u32 %s2123_s7, 4  ;;  %s2023_s8 = int_to_ptr.vmem [resolvable:$false] %s2022_s8 }
  0x43   : > { %s2024_s16 = scalar_lea.vmem %s2023_s8, 256  ;;  %p2025_p8 = scmp.lt.s32.totalorder %s177_s26, %s2023_s8 }
  0x44   : > { %p2020_p1 = pnand %p2018_p9, %p1974_p3  ;;  %p2026_p11 = scmp.lt.s32.totalorder %s2024_s16, %s2017_s25 }
  0x46   : > { %p2021_p5 = pneg %p2020_p1  ;;  %p2027_p2 = por %p2026_p11, %p2025_p8 }
  0x48   : > { %p2028_p4 = pnand %p2027_p2, %p2021_p5 }
  0x4a   : > { %2031 = shalt.err (!%p2028_p4)
}
  0x4b   : > { %1911 = dma.hbm_to_vmem [thread:$0]  (!%p2213_p0), %s2265_s19, 128, %s177_s26, %s165_s3  }
  0x4c   : > { %p2460_p13 = scmp.ne.s32.totalorder %s2459_s15, 0 }
  0x4d   : > { %s2290_s18 = sand.u32 (!%p2460_p13), 1, %s2102_s10   ;;  %p2461_p3 = scmp.ne.s32.totalorder (!%p2460_p13), %s2454_s21, 0 }
  0x4e   : > { %185 = sbr.rel (%p2460_p13) target bundleno = 413 (0x19d), region = 28  ;;  %s188_s5 = scalar_lea.sflag (!%p2460_p13), [#allocation3], %s2290_s18 }
  0x4f   : > { %s1898_s20 = smul.u32 (!%p2460_p13), 24, %s2290_s18 }
  0x51   : > { %s191_s6 = scalar_lea.vmem (!%p2460_p13), [#allocation2], %s1898_s20 }
  0x55   : > { %2085 = dma.done.wait (%p2461_p3), %s188_s5, 384  }
  0x56   : > { %2087 = vsyncadd (%p2461_p3), %s188_s5, 4294966912  ;;  %s1733_s28 = sshll.u32 %s2290_s18, 3  ;;  %s197_s15 = scalar_lea.sflag [#allocation6], %s2290_s18 }
  0x57   : > { %s200_s19 = scalar_lea.vmem [#allocation5], %s1733_s28 }
  0x58   : > { %2089 = dma.done.wait (%p2461_p3), %s197_s15, 128  }
  0x59   : > { %2091 = vsyncadd (%p2461_p3), %s197_s15, 4294967168  ;;  %v2124_v0 = vmov 0.0   ;;  %vm2125_vm0 = vmmov 0   ;;  %vm233_vm1 = vcmask 64512   ;;  %v232_v1 = vld [vmem:[%s200_s19] sm:$0xff]  ;;  %v1735_v12 = vld [vmem:[%s191_s6 + $0x8] sm:$0xff] }
  0x5a   : > { %1792 = vmatprep.subr.mxu0 %v2124_v0  ;;  %1794 = vmatprep.mubr.msk.f32.mxu0 %vm2125_vm0, %v2124_v0  ;;  %v231_v2 = vld [vmem:[%s191_s6] sm:$0xff]  ;;  %v2312_v3 = vand.u32 4294901760, %v232_v1  ;;  %v1736_v6 = vld [vmem:[%s191_s6 + $0x10] sm:$0xff]  ;;  %v687_v17 = vsel %vm233_vm1, %v1735_v12, 0  ;;  %s1738_s21 = sshll.u32 %s2110_s12, 7  ;;  %s225_s26 = scalar_lea.vmem [#allocation7], %s1733_s28 }
  0x5b   : > { %1777 = vmatprep.subr.mxu1 %v2124_v0  ;;  %1779 = vmatprep.mubr.msk.f32.mxu1 %vm2125_vm0, %v2124_v0  ;;  %v235_v4 = vsel %vm233_vm1, %v231_v2, 0  ;;  %v1140_v10 = vsel %vm233_vm1, %v1736_v6, 0  ;;  %v2332_v20 = vand.u32 4294901760, %v687_v17  ;;  %s1617_s3 = sshll.u32 %s225_s26, 4  ;;  %s2399_s30 = scalar_lea.hbm %s2450_s2, %s1738_s21  ;;  %s2401_s3 = int_to_ptr.vmem [resolvable:$true] %s1617_s3 }
  0x5c   : > { %v303_v5 = vand.u32 4294901760, %v235_v4  ;;  %1793 = vmatpush3.msra.mxu0 %v2312_v3  ;;  %1778 = vmatpush3.msra.mxu1 %v2312_v3  ;;  %v315_v7 = vsub.f32 %v232_v1, %v2312_v3  ;;  %v2324_v15 = vand.u32 4294901760, %v1140_v10  ;;  %s1603_s4 = scalar_lea.sflag [#allocation4], %s2290_s18  ;;  %s2032_s25 = scalar_lea.vmem %s2401_s3, 128 }
  0x5d   : > { %1782 = vmatprep.subr.mxu1 %v2124_v0  ;;  %1797 = vmatprep.subr.mxu0 %v2124_v0  ;;  %v756_v22 = vsub.f32 %v687_v17, %v2332_v20  ;;  %p2033_p8 = scmp.ne.s32.totalorder %s2401_s3, %s2032_s25  ;;  %p2462_p0 = scmp.ne.s32.totalorder %s2455_s22, 0 }
  0x5e   : > { %v304_v8 = vsub.f32 %v235_v4, %v303_v5  ;;  %v2320_v9 = vand.u32 4294901760, %v315_v7  ;;  %v1209_v19 = vsub.f32 %v1140_v10, %v2324_v15  ;;  %s2126_s12 = smov [#allocation7]  }
  0x5f   : > { %v757_v24 = vand.u32 4294901760, %v756_v22  ;;  %p2034_p11 = pnand %p2033_p8, %p2462_p0  ;;  %s2036_s7 = sshll.u32 %s2126_s12, 4  ;;  %s2037_s7 = int_to_ptr.vmem [resolvable:$false] %s2036_s7 }
  0x60   : > { %v305_v11 = vand.u32 4294901760, %v304_v8  ;;  %v317_v13 = vsub.f32 %v315_v7, %v2320_v9  ;;  %v1210_v21 = vand.u32 4294901760, %v1209_v19  ;;  %s2038_s8 = scalar_lea.vmem %s2037_s7, 256  ;;  %p2039_p7 = scmp.lt.s32.totalorder %s2401_s3, %s2037_s7 }
  0x61   : > { %v758_v26 = vsub.f32 %v756_v22, %v757_v24  ;;  %p2035_p6 = pneg %p2034_p11  ;;  %p2040_p10 = scmp.lt.s32.totalorder %s2038_s8, %s2032_s25 }
  0x62   : > { %1795 = vmatmul.mubr.f32.vlgmr.msra.gmra.mrb[0].mxu0 %v305_v11  ;;  %v306_v14 = vsub.f32 %v304_v8, %v305_v11  ;;  %v318_v16 = vand.u32 4294901760, %v317_v13  ;;  %v1211_v23 = vsub.f32 %v1209_v19, %v1210_v21 }
  0x63   : > { %1798 = vmatpush3.msra.mxu0 %v2320_v9  ;;  %1799 = vmatprep.mubr.msk.f32.mxu0 %vm2125_vm0, %v2124_v0  ;;  %v759_v27 = vand.u32 4294901760, %v758_v26  ;;  %p2041_p12 = por %p2040_p10, %p2039_p7 }
  0x64   : > { %v307_v18 = vand.u32 4294901760, %v306_v14  ;;  %1802 = vmatprep.subr.mxu0 %v2124_v0  ;;  %v1212_v25 = vand.u32 4294901760, %v1211_v23 }
  0x65   : > { %p2042_p9 = pnand %p2041_p12, %p2035_p6 }
  0x66   : > { %1780 = vmatmul.mubr.f32.vlgmr.msra.gmra.mrb[0].mxu1 %v307_v18 }
  0x67   : > { %1783 = vmatpush3.msra.mxu1 %v318_v16  ;;  %1784 = vmatprep.mubr.msk.f32.mxu1 %vm2125_vm0, %v2124_v0 }
  0x68   : > { %1787 = vmatprep.subr.mxu1 %v2124_v0 }
  0x6a   : > { %1800 = vmatmul.mubr.f32.vlgmr.msra.gmra.mrb[0].mxu0 %v303_v5 }
  0x6b   : > { %1803 = vmatpush3.msra.mxu0 %v2312_v3  ;;  %1804 = vmatprep.mubr.msk.f32.mxu0 %vm2125_vm0, %v2124_v0 }
  0x6c   : > { %1837 = vmatprep.subr.mxu0 %v2124_v0 }
  0x6e   : > { %1785 = vmatmul.mubr.f32.vlgmr.msra.gmra.mrb[0].mxu1 %v303_v5 }
  0x6f   : > { %1788 = vmatpush3.msra.mxu1 %v315_v7  ;;  %1789 = vmatprep.mubr.msk.f32.mxu1 %vm2125_vm0, %v2124_v0 }
  0x70   : > { %1807 = vmatprep.subr.mxu1 %v2124_v0 }
  0x72   : > { %1805 = vmatmul.mubr.f32.vlgmr.msra.gmra.mrb[0].mxu0 %v303_v5 }
  0x73   : > { %1838 = vmatpush3.msra.mxu0 %v2312_v3  ;;  %1839 = vmatprep.mubr.msk.f32.mxu0 %vm2125_vm0, %v2124_v0 }
  0x74   : > { %1842 = vmatprep.subr.mxu0 %v2124_v0 }
  0x76   : > { %1790 = vmatmul.mubr.f32.vlgmr.msra.gmra.mrb[0].mxu1 %v304_v8  ;;  %1840 = vmatmul.mubr.f32.vlgmr.msra.gmra.mrb[2].mxu0 %v1212_v25 }
  0x77   : > { %1808 = vmatpush3.msra.mxu1 %v2312_v3  ;;  %1809 = vmatprep.mubr.msk.f32.mxu1 %vm2125_vm0, %v2124_v0 }
  0x78   : > { %1812 = vmatprep.subr.mxu1 %v2124_v0  ;;  %1843 = vmatpush3.msra.mxu0 %v318_v16 }
  0x79   : > { %1844 = vmatprep.mubr.msk.f32.mxu0 %vm2125_vm0, %v2124_v0  ;;  %1847 = vmatprep.subr.mxu0 %v2124_v0 }
  0x7a   : > { %1810 = vmatmul.mubr.f32.vlgmr.msra.gmra.mrb[2].mxu1 %v759_v27 }
  0x7b   : > { %1813 = vmatpush3.msra.mxu1 %v318_v16  ;;  %1814 = vmatprep.mubr.msk.f32.mxu1 %vm2125_vm0, %v2124_v0 }
  0x7c   : > { %1817 = vmatprep.subr.mxu1 %v2124_v0 }
  0x7e   : > { %1845 = vmatmul.mubr.f32.vlgmr.msra.gmra.mrb[2].mxu0 %v2324_v15 }
  0x7f   : > { %1848 = vmatpush3.msra.mxu0 %v315_v7  ;;  %1849 = vmatprep.mubr.msk.f32.mxu0 %vm2125_vm0, %v2124_v0 }
  0x80   : > { %1852 = vmatprep.subr.mxu0 %v2124_v0 }
  0x82   : > { %1815 = vmatmul.mubr.f32.vlgmr.msra.gmra.mrb[2].mxu1 %v2332_v20 }
  0x83   : > { %1818 = vmatpush3.msra.mxu1 %v315_v7  ;;  %1819 = vmatprep.mubr.msk.f32.mxu1 %vm2125_vm0, %v2124_v0 }
  0x84   : > { %1822 = vmatprep.subr.mxu1 %v2124_v0 }
  0x86   : > { %1850 = vmatmul.mubr.f32.vlgmr.msra.gmra.mrb[2].mxu0 %v1209_v19 }
  0x87   : > { %1853 = vmatpush3.msra.mxu0 %v2312_v3  ;;  %1854 = vmatprep.mubr.msk.f32.mxu0 %vm2125_vm0, %v2124_v0 }
  0x88   : > { %1857 = vmatprep.subr.mxu0 %v2124_v0 }
  0x8a   : > { %1820 = vmatmul.mubr.f32.vlgmr.msra.gmra.mrb[2].mxu1 %v756_v22 }
  0x8b   : > { %1823 = vmatpush3.msra.mxu1 %v2312_v3  ;;  %1824 = vmatprep.mubr.msk.f32.mxu1 %vm2125_vm0, %v2124_v0 }
  0x8c   : > { %1827 = vmatprep.subr.mxu1 %v2124_v0 }
  0x8e   : > { %1855 = vmatmul.mubr.f32.vlgmr.msra.gmra.mrb[2].mxu0 %v1210_v21 }
  0x8f   : > { %1858 = vmatpush3.msra.mxu0 %v2320_v9  ;;  %1859 = vmatprep.mubr.msk.f32.mxu0 %vm2125_vm0, %v2124_v0 }
  0x90   : > { %1862 = vmatprep.subr.mxu0 %v2124_v0 }
  0x92   : > { %1825 = vmatmul.mubr.f32.vlgmr.msra.gmra.mrb[2].mxu1 %v757_v24 }
  0x93   : > { %1828 = vmatpush3.msra.mxu1 %v2320_v9  ;;  %1829 = vmatprep.mubr.msk.f32.mxu1 %vm2125_vm0, %v2124_v0 }
  0x94   : > { %1832 = vmatprep.subr.mxu1 %v2124_v0 }
  0x96   : > { %1860 = vmatmul.mubr.f32.vlgmr.msra.gmra.mrb[2].mxu0 %v2324_v15 }
  0x97   : > { %1863 = vmatpush3.msra.mxu0 %v2312_v3  ;;  %1864 = vmatprep.mubr.msk.f32.mxu0 %vm2125_vm0, %v2124_v0 }
  0x9a   : > { %1830 = vmatmul.mubr.f32.vlgmr.msra.gmra.mrb[2].mxu1 %v2332_v20 }
  0x9b   : > { %1833 = vmatpush3.msra.mxu1 %v2312_v3  ;;  %1834 = vmatprep.mubr.msk.f32.mxu1 %vm2125_vm0, %v2124_v0 }
  0x9e   : > { %1865 = vmatmul.mubr.f32.vlgmr.msra.gmra.mrb[2].mxu0 %v2324_v15 }
  0xa2   : > { %1835 = vmatmul.mubr.f32.vlgmr.msra.gmra.mrb[2].mxu1 %v2332_v20 }
 0x145   : > { %v679_v28 = vpop.f32.mrb[0].mxu0 }
 0x146   : > { %v1806_v29 = vpop.f32.mrb[1].mxu0 }
 0x149   : > { %v459_v30 = vpop.f32.mrb[0].mxu1 }
 0x14a   : > { %v1867_v31 = vadd.f32 %v679_v28, %v459_v30  ;;  %v1791_v32 = vpop.f32.mrb[1].mxu1 }
 0x14c   : > { %v683_v36 = vmul.f32 %v1867_v31, %v1867_v31 }
 0x171   : > { %v1584_v33 = vpop.f32.mrb[2].mxu0 }
 0x172   : > { %v1866_v34 = vpop.f32.mrb[3].mxu0  ;;  %v1588_v39 = vmul.f32 %v1584_v33, %v1584_v33 }
 0x175   : > { %v1131_v35 = vpop.f32.mrb[2].mxu1 }
 0x176   : > { %v1135_v37 = vmul.f32 %v1131_v35, %v1131_v35  ;;  %v1836_v38 = vpop.f32.mrb[3].mxu1 }
 0x178   : > { %v1136_v40 = vadd.f32 %v1135_v37, %v683_v36 }
 0x17a   : > { %v1589_v41 = vadd.f32 %v1588_v39, %v1136_v40 }
 0x17c   : > { %v1590_v42 = vadd.f32 1e-08, %v1589_v41 }
 0x17e   : > { %v1591_v43 = vmin.f32 %v1590_v42, 100.0 }
 0x180   : > { %1970 = vrsqrt.f32 %v1591_v43  ;;  %vm1594_vm2 = vcmp.eq.f32.partialorder %v1591_v43, inf  ;;  %v1597_v46 = vand.u32 2147483648, %v1591_v43  ;;  %vm1596_vm3 = vcmp.eq.f32.partialorder %v1591_v43, 0.0 }
 0x18a   : > { %v1971_v44 = vpop.eup %1970 }
 0x18b   : > { %v1593_v45 = vmul.f32 %v1971_v44, %v1591_v43 }
 0x18d   : > { %v1595_v47 = vsel %vm1594_vm2, %v1591_v43, %v1593_v45 }
 0x18e   : > { %v1598_v48 = vsel %vm1596_vm3, %v1597_v46, %v1595_v47 }
 0x18f   : > { %1601 = vst [vmem:[%s225_s26] sm:$0xff] %v1598_v48 }
 0x190   : > { %2045 = shalt.err (!%p2042_p9)
}
 0x191   : > { %s2046_s16 = scalar_lea.hbm %s2399_s30, 128  ;;  %s2050_s5 = scalar_lea.hbm %s2450_s2, 256 }
 0x192   : > { %p2047_p1 = scmp.ne.s32.totalorder %s2399_s30, %s2046_s16  ;;  %p2051_p4 = scmp.lt.u32.totalorder %s2399_s30, %s2450_s2 }
 0x193   : > { %p2052_p13 = scmp.lt.u32.totalorder %s2050_s5, %s2046_s16  ;;  %p2054_p8 = scmp.lt.u32.totalorder %s2046_s16, %s2399_s30 }
 0x194   : > { %p2048_p5 = pnand %p2047_p1, %p2462_p0 }
 0x195   : > { %p2053_p3 = por %p2052_p13, %p2051_p4 }
 0x196   : > { %p2049_p2 = pneg %p2048_p5 }
 0x197   : > { %p2055_p11 = por %p2054_p8, %p2053_p3 }
 0x199   : > { %p2056_p6 = pnand %p2055_p11, %p2049_p2 }
 0x19b   : > { %2059 = shalt.err (!%p2056_p6)
}
 0x19c   : > { %1903 = dma.vmem_to_hbm [thread:$0]  (%p2462_p0), %s2401_s3, 128, %s2399_s30, %s1603_s4  }
 0x19d PF: > { %s1629_s15 = sand.u32 1, %s2098_s9   ;;  %p2463_p7 = scmp.ne.s32.totalorder %s2456_s24, 0 }
 0x19e   : > { %p2464_p10 = scmp.ge.s32.totalorder %s2118_s14, 2  ;;  %s1630_s19 = scalar_lea.sflag [#allocation4], %s1629_s15 }
 0x1a0   : > { %p1913_p12 = pnand %p2464_p10, %p2463_p7 }
 0x1a2   : > { %2093 = dma.done.wait (!%p1913_p12), %s1630_s19, 128  }
 0x1a3   : > { %2095 = vsyncadd (!%p1913_p12), %s1630_s19, 4294967168  ;;  %s21_s14 = sadd.s32 1, %s2118_s14   ;;  %s2465_s9 = smov %s2102_s10 }
 0x1a4   : > { %p18_p9 = scmp.ge.s32.totalorder %s21_s14, 4   ;;  %s2466_s10 = smov %s2106_s11 }
 0x1a5   : > { %s2467_s11 = smov %s2198_s23  ;;  %s2468_s12 = smov %s2114_s13 }
 0x1a6   : > { %s2469_s13 = smov %s2471_s17  ;;  %20 = sbr.rel (!%p18_p9) target bundleno = 8 (0x8), region = 92 }
 0x1ad   :  { %1635 = vsyncpa [#allocation3], 1 }
 0x1ae   :  { %1637 = vsyncpa [#allocation3 + $0x1], 1 }
 0x1af   :  { %1638 = vsyncpa [#allocation6], 1 }
 0x1b0   :  { %1640 = vsyncpa [#allocation6 + $0x1], 1 }
 0x1b1   :  { %1641 = vsyncpa [#allocation4], 1 }
 0x1b2   :  { %1643 = vsyncpa [#allocation4 + $0x1], 1 }

</bundles_post_ra>
